<compile_context>
chip_gen: v7x
topology: tpu7x:2x2x1
jax: 0.10.0
libtpu: 0.0.40
codegen_flags: <defaults>
</compile_context>

<pallas_src>
import jax
import jax.numpy as jnp
from jax.experimental import pallas as pl
from jax.experimental.pallas import tpu as pltpu


def _outconv_vpu_kernel(x_ref, w_ref, b_ref, o_ref):
    """1x1 conv on one (Cin, ts) spatial tile; channel mix on the VPU.

    x_ref: VMEM (Cin, ts)    -- activations for one image / spatial tile
    w_ref: SMEM (Cout*Cin,)  -- flattened conv weight, row-major (co, ci)
    b_ref: SMEM (Cout,)      -- bias
    o_ref: VMEM (Cout, ts)
    """
    cin = x_ref.shape[0]
    cout = o_ref.shape[0]
    x = x_ref[...].astype(jnp.float32)                 # (Cin, ts), lane-dense
    rows = []
    for co in range(cout):                             # statically unrolled
        acc = x[0:1, :] * w_ref[co * cin + 0]
        for ci in range(1, cin):
            acc = acc + x[ci:ci + 1, :] * w_ref[co * cin + ci]
        rows.append(acc + b_ref[co])
    # One full-block store (all Cout sublanes at once, lane-dense).
    o_ref[...] = jnp.concatenate(rows, axis=0).astype(o_ref.dtype)


def _outconv_mxu_kernel(x_ref, w_ref, b_ref, o_ref):
    """1x1 conv on one (Cin, ts) spatial tile; channel mix on the MXU.

    x_ref: VMEM (Cin, ts)
    w_ref: VMEM (Cout, Cin)
    b_ref: VMEM (Cout, 1)
    o_ref: VMEM (Cout, ts)
    """
    x = x_ref[...].astype(jnp.float32)                 # (Cin, ts)
    y = jnp.dot(w_ref[...], x, preferred_element_type=jnp.float32)  # (Cout, ts)
    o_ref[...] = (y + b_ref[...]).astype(o_ref.dtype)


def out_conv(x_nchw, weight, bias, *, spatial_tile=4096):
    """1x1 conv (OutConv.forward).

    x_nchw: (N, Cin, H, W); weight: (Cout, Cin, 1, 1); bias: (Cout,).
    Returns (N, Cout, H, W) with the dtype of x.
    """
    N, Cin, H, W = x_nchw.shape
    Cout = weight.shape[0]
    HW = H * W

    # Free, contiguous reshape -- no transpose, no extra HBM pass.
    x3 = x_nchw.reshape(N, Cin, HW)

    # Lane-dense spatial tile: full row if it fits the per-buffer budget,
    # otherwise the largest multiple of 128 under the budget (Pallas masks
    # the partial last block).
    bytes_per_lane = (Cin + Cout) * 4                  # f32 in-kernel
    budget = 8 * 1024 * 1024                           # per-buffer target
    max_ts = max(128, (budget // bytes_per_lane) // 128 * 128)
    if HW <= max_ts:
        ts = HW
    else:
        ts = min(max_ts, max(128, spatial_tile - (spatial_tile % 128)))
    n_s = pl.cdiv(HW, ts)

    use_mxu = (Cin * Cout) >= 256

    if use_mxu:
        w2 = weight.reshape(Cout, Cin).astype(jnp.float32)
        b2 = bias.reshape(Cout, 1).astype(jnp.float32)
        kernel = _outconv_mxu_kernel
        operands = (x3, w2, b2)
        in_specs = [
            pl.BlockSpec((None, Cin, ts), lambda n, s: (n, 0, s)),
            pl.BlockSpec((Cout, Cin), lambda n, s: (0, 0)),   # resident weight
            pl.BlockSpec((Cout, 1), lambda n, s: (0, 0)),     # resident bias
        ]
    else:
        w_flat = weight.reshape(Cout * Cin).astype(jnp.float32)  # tiny -> SMEM
        b_vec = bias.reshape(Cout).astype(jnp.float32)           # tiny -> SMEM
        kernel = _outconv_vpu_kernel
        operands = (x3, w_flat, b_vec)
        in_specs = [
            pl.BlockSpec((None, Cin, ts), lambda n, s: (n, 0, s)),
            pl.BlockSpec(memory_space=pltpu.MemorySpace.SMEM),
            pl.BlockSpec(memory_space=pltpu.MemorySpace.SMEM),
        ]

    grid_spec = pltpu.PrefetchScalarGridSpec(
        num_scalar_prefetch=0,
        grid=(N, n_s),
        in_specs=in_specs,
        out_specs=pl.BlockSpec((None, Cout, ts), lambda n, s: (n, 0, s)),
    )

    y3 = pl.pallas_call(
        kernel,
        out_shape=jax.ShapeDtypeStruct((N, Cout, HW), x_nchw.dtype),
        grid_spec=grid_spec,
        compiler_params=pltpu.CompilerParams(
            # Independent tiles -> shard across TensorCores (v7x megacore).
            dimension_semantics=("parallel", "parallel"),
            # Explicit budget; v7x has 64 MiB physical / 32 MiB default scoped
            # VMEM and the double-buffered in+out tiles stay well under this.
            vmem_limit_bytes=32 * 1024 * 1024,
        ),
    )(*operands)

    return y3.reshape(N, Cout, H, W)


def _reference(x, weight, bias):
    Cout, Cin = weight.shape[0], weight.shape[1]
    return (jnp.einsum("nchw,oc->nohw", x, weight.reshape(Cout, Cin))
            + bias[None, :, None, None])


if __name__ == "__main__":
    key = jax.random.PRNGKey(0)
    k_x, k_w, k_b, k_x2, k_w2, k_b2 = jax.random.split(key, 6)

    # --- Small-channel case (VPU path), shapes implied by the module ---
    N, Cin, H, W = 2, 4, 16, 16
    Cout = 3
    fan_in = Cin  # kernel_size = 1
    bound = 1.0 / (fan_in ** 0.5)
    weight = jax.random.uniform(k_w, (Cout, Cin, 1, 1), jnp.float32, -bound, bound)
    bias = jax.random.uniform(k_b, (Cout,), jnp.float32, -bound, bound)
    x = jax.random.normal(k_x, (N, Cin, H, W), jnp.float32)

    y = jax.block_until_ready(out_conv(x, weight, bias))
    y_ref = _reference(x, weight, bias)
    assert y.shape == (N, Cout, H, W)
    assert jnp.allclose(y, y_ref, atol=1e-5, rtol=1e-5)

    # --- Larger-channel case (MXU path) ---
    N2, Cin2, Cout2, H2, W2 = 1, 32, 16, 16, 16
    bound2 = 1.0 / (Cin2 ** 0.5)
    weight2 = jax.random.uniform(k_w2, (Cout2, Cin2, 1, 1), jnp.float32, -bound2, bound2)
    bias2 = jax.random.uniform(k_b2, (Cout2,), jnp.float32, -bound2, bound2)
    x2 = jax.random.normal(k_x2, (N2, Cin2, H2, W2), jnp.float32)

    y2 = jax.block_until_ready(out_conv(x2, weight2, bias2))
    y2_ref = _reference(x2, weight2, bias2)
    assert y2.shape == (N2, Cout2, H2, W2)
    assert jnp.allclose(y2, y2_ref, atol=1e-4, rtol=1e-4)

    print("KERNEL_OK")
</pallas_src>

<mosaic_0001>
module attributes {stable_mosaic.version = 11 : i64} {
  func.func @_outconv_vpu_kernel(%arg0: i32, %arg1: i32, %arg2: memref<1x4x256xf32, #tpu.memory_space<vmem>>, %arg3: memref<12xf32, #tpu.memory_space<smem>>, %arg4: memref<3xf32, #tpu.memory_space<smem>>, %arg5: memref<1x3x256xf32, #tpu.memory_space<vmem>>) attributes {dimension_semantics = [#tpu.dimension_semantics<parallel>, #tpu.dimension_semantics<parallel>], iteration_bounds = array<i64: 2, 1>, scalar_prefetch = 0 : i64, scratch_operands = 0 : i64, tpu.core_type = #tpu.core_type<tc>, window_params = [{transform_indices = @transform_0, window_bounds = array<i64: 1, 4, 256>}, {transform_indices = @transform_1, window_bounds = array<i64: 12>}, {transform_indices = @transform_2, window_bounds = array<i64: 3>}, {transform_indices = @transform_3, window_bounds = array<i64: 1, 3, 256>}]} {
    %c0 = arith.constant 0 : index
    %c0_0 = arith.constant 0 : index
    %c0_1 = arith.constant 0 : index
    %0 = vector.load %arg2[%c0, %c0_0, %c0_1] : memref<1x4x256xf32, #tpu.memory_space<vmem>>, vector<1x4x256xf32>
    %1 = vector.shape_cast %0 : vector<1x4x256xf32> to vector<4x256xf32>
    %2 = vector.extract_strided_slice %1 {offsets = [0, 0], sizes = [1, 256], strides = [1, 1]} : vector<4x256xf32> to vector<1x256xf32>
    %c0_2 = arith.constant 0 : index
    %3 = memref.load %arg3[%c0_2] : memref<12xf32, #tpu.memory_space<smem>>
    %4 = vector.broadcast %3 : f32 to vector<1x256xf32>
    %5 = arith.mulf %2, %4 : vector<1x256xf32>
    %6 = vector.extract_strided_slice %1 {offsets = [1, 0], sizes = [1, 256], strides = [1, 1]} : vector<4x256xf32> to vector<1x256xf32>
    %c1 = arith.constant 1 : index
    %7 = memref.load %arg3[%c1] : memref<12xf32, #tpu.memory_space<smem>>
    %8 = vector.broadcast %7 : f32 to vector<1x256xf32>
    %9 = arith.mulf %6, %8 : vector<1x256xf32>
    %10 = arith.addf %5, %9 : vector<1x256xf32>
    %11 = vector.extract_strided_slice %1 {offsets = [2, 0], sizes = [1, 256], strides = [1, 1]} : vector<4x256xf32> to vector<1x256xf32>
    %c2 = arith.constant 2 : index
    %12 = memref.load %arg3[%c2] : memref<12xf32, #tpu.memory_space<smem>>
    %13 = vector.broadcast %12 : f32 to vector<1x256xf32>
    %14 = arith.mulf %11, %13 : vector<1x256xf32>
    %15 = arith.addf %10, %14 : vector<1x256xf32>
    %16 = vector.extract_strided_slice %1 {offsets = [3, 0], sizes = [1, 256], strides = [1, 1]} : vector<4x256xf32> to vector<1x256xf32>
    %c3 = arith.constant 3 : index
    %17 = memref.load %arg3[%c3] : memref<12xf32, #tpu.memory_space<smem>>
    %18 = vector.broadcast %17 : f32 to vector<1x256xf32>
    %19 = arith.mulf %16, %18 : vector<1x256xf32>
    %20 = arith.addf %15, %19 : vector<1x256xf32>
    %c0_3 = arith.constant 0 : index
    %21 = memref.load %arg4[%c0_3] : memref<3xf32, #tpu.memory_space<smem>>
    %22 = vector.broadcast %21 : f32 to vector<1x256xf32>
    %23 = arith.addf %20, %22 : vector<1x256xf32>
    %24 = vector.extract_strided_slice %1 {offsets = [0, 0], sizes = [1, 256], strides = [1, 1]} : vector<4x256xf32> to vector<1x256xf32>
    %c4 = arith.constant 4 : index
    %25 = memref.load %arg3[%c4] : memref<12xf32, #tpu.memory_space<smem>>
    %26 = vector.broadcast %25 : f32 to vector<1x256xf32>
    %27 = arith.mulf %24, %26 : vector<1x256xf32>
    %28 = vector.extract_strided_slice %1 {offsets = [1, 0], sizes = [1, 256], strides = [1, 1]} : vector<4x256xf32> to vector<1x256xf32>
    %c5 = arith.constant 5 : index
    %29 = memref.load %arg3[%c5] : memref<12xf32, #tpu.memory_space<smem>>
    %30 = vector.broadcast %29 : f32 to vector<1x256xf32>
    %31 = arith.mulf %28, %30 : vector<1x256xf32>
    %32 = arith.addf %27, %31 : vector<1x256xf32>
    %33 = vector.extract_strided_slice %1 {offsets = [2, 0], sizes = [1, 256], strides = [1, 1]} : vector<4x256xf32> to vector<1x256xf32>
    %c6 = arith.constant 6 : index
    %34 = memref.load %arg3[%c6] : memref<12xf32, #tpu.memory_space<smem>>
    %35 = vector.broadcast %34 : f32 to vector<1x256xf32>
    %36 = arith.mulf %33, %35 : vector<1x256xf32>
    %37 = arith.addf %32, %36 : vector<1x256xf32>
    %38 = vector.extract_strided_slice %1 {offsets = [3, 0], sizes = [1, 256], strides = [1, 1]} : vector<4x256xf32> to vector<1x256xf32>
    %c7 = arith.constant 7 : index
    %39 = memref.load %arg3[%c7] : memref<12xf32, #tpu.memory_space<smem>>
    %40 = vector.broadcast %39 : f32 to vector<1x256xf32>
    %41 = arith.mulf %38, %40 : vector<1x256xf32>
    %42 = arith.addf %37, %41 : vector<1x256xf32>
    %c1_4 = arith.constant 1 : index
    %43 = memref.load %arg4[%c1_4] : memref<3xf32, #tpu.memory_space<smem>>
    %44 = vector.broadcast %43 : f32 to vector<1x256xf32>
    %45 = arith.addf %42, %44 : vector<1x256xf32>
    %46 = vector.extract_strided_slice %1 {offsets = [0, 0], sizes = [1, 256], strides = [1, 1]} : vector<4x256xf32> to vector<1x256xf32>
    %c8 = arith.constant 8 : index
    %47 = memref.load %arg3[%c8] : memref<12xf32, #tpu.memory_space<smem>>
    %48 = vector.broadcast %47 : f32 to vector<1x256xf32>
    %49 = arith.mulf %46, %48 : vector<1x256xf32>
    %50 = vector.extract_strided_slice %1 {offsets = [1, 0], sizes = [1, 256], strides = [1, 1]} : vector<4x256xf32> to vector<1x256xf32>
    %c9 = arith.constant 9 : index
    %51 = memref.load %arg3[%c9] : memref<12xf32, #tpu.memory_space<smem>>
    %52 = vector.broadcast %51 : f32 to vector<1x256xf32>
    %53 = arith.mulf %50, %52 : vector<1x256xf32>
    %54 = arith.addf %49, %53 : vector<1x256xf32>
    %55 = vector.extract_strided_slice %1 {offsets = [2, 0], sizes = [1, 256], strides = [1, 1]} : vector<4x256xf32> to vector<1x256xf32>
    %c10 = arith.constant 10 : index
    %56 = memref.load %arg3[%c10] : memref<12xf32, #tpu.memory_space<smem>>
    %57 = vector.broadcast %56 : f32 to vector<1x256xf32>
    %58 = arith.mulf %55, %57 : vector<1x256xf32>
    %59 = arith.addf %54, %58 : vector<1x256xf32>
    %60 = vector.extract_strided_slice %1 {offsets = [3, 0], sizes = [1, 256], strides = [1, 1]} : vector<4x256xf32> to vector<1x256xf32>
    %c11 = arith.constant 11 : index
    %61 = memref.load %arg3[%c11] : memref<12xf32, #tpu.memory_space<smem>>
    %62 = vector.broadcast %61 : f32 to vector<1x256xf32>
    %63 = arith.mulf %60, %62 : vector<1x256xf32>
    %64 = arith.addf %59, %63 : vector<1x256xf32>
    %c2_5 = arith.constant 2 : index
    %65 = memref.load %arg4[%c2_5] : memref<3xf32, #tpu.memory_space<smem>>
    %66 = vector.broadcast %65 : f32 to vector<1x256xf32>
    %67 = arith.addf %64, %66 : vector<1x256xf32>
    %68 = tpu.concatenate %23, %45, %67 in 0 : vector<1x256xf32>, vector<1x256xf32>, vector<1x256xf32> -> vector<3x256xf32>
    %c0_6 = arith.constant 0 : index
    %c0_7 = arith.constant 0 : index
    %c0_8 = arith.constant 0 : index
    %69 = vector.load %arg5[%c0_6, %c0_7, %c0_8] : memref<1x3x256xf32, #tpu.memory_space<vmem>>, vector<1x3x256xf32>
    %70 = vector.shape_cast %69 : vector<1x3x256xf32> to vector<3x256xf32>
    %71 = vector.shape_cast %68 : vector<3x256xf32> to vector<1x3x256xf32>
    tpu.vector_store %arg5[%c0_6, %c0_7, %c0_8], %71 {strides = array<i32>} : memref<1x3x256xf32, #tpu.memory_space<vmem>>, vector<1x3x256xf32>,
    return
  }
  func.func @transform_0(%arg0: i32, %arg1: i32) -> (i32, i32, i32) {
    %c0_i32 = arith.constant 0 : i32
    %c0_i32_0 = arith.constant 0 : i32
    return %arg0, %c0_i32, %arg1 : i32, i32, i32
  }
  func.func @transform_1(%arg0: i32, %arg1: i32) -> i32 {
    %c0_i32 = arith.constant 0 : i32
    %c0_i32_0 = arith.constant 0 : i32
    return %c0_i32 : i32
  }
  func.func @transform_2(%arg0: i32, %arg1: i32) -> i32 {
    %c0_i32 = arith.constant 0 : i32
    %c0_i32_0 = arith.constant 0 : i32
    return %c0_i32 : i32
  }
  func.func @transform_3(%arg0: i32, %arg1: i32) -> (i32, i32, i32) {
    %c0_i32 = arith.constant 0 : i32
    %c0_i32_0 = arith.constant 0 : i32
    return %arg0, %c0_i32, %arg1 : i32, i32, i32
  }
}

</mosaic_0001>

<bundles_post_ra>
// kernel: tpu_custom_call.1
= control target key start
LH: loop header
LB: loop body
LE: loop exit
PB: predicated region body
PF: predicated region fallthrough
CT: control target
= control target key end

     0   :  { %8 = vsyncpa [#allocation3], 0  ;;  %s928_s0 = inlined_call_operand.hbm [shape: f32[2,4,256], index: 0, kind: input, shape index: {}]   ;;  %s929_s1 = inlined_call_operand.vmem [shape: f32[12], index: 1, kind: input, shape index: {}]   ;;  %s930_s2 = inlined_call_operand.vmem [shape: f32[3], index: 2, kind: input, shape index: {}]   ;;  %s931_s3 = inlined_call_operand.vmem [shape: f32[2,3,256], index: 3, kind: output, shape index: {}]  }
   0x1   :  { %10 = vsyncpa [#allocation3 + $0x1], 0 }
   0x2   :  { %11 = vsyncpa [#allocation4], 0 }
   0x3   :  { %12 = vsyncpa [#allocation7], 0  ;;  %s756_s12 = smov 0   ;;  %s758_s13 = smov 0  }
   0x4   :  { %s760_s14 = smov 0   ;;  %s762_s15 = smov 0  }
   0x5   :  { %s764_s16 = smov 0   ;;  %s766_s17 = smov 0  }
   0x6 LB: > { %s496_s18 = sadd.s32 4294967295, %s731_s17   ;;  %p52_p0 = scmp.ne.s32.totalorder %s715_s13, %s711_s12  ;;  %s731_s17 = sphi %s766_s17, %s18_s17   ;;  %s727_s16 = sphi %s764_s16, %s949_s16   ;;  %s723_s15 = sphi %s762_s15, %s948_s15   ;;  %s719_s14 = sphi %s760_s14, %s947_s14   ;;  %s715_s13 = sphi %s758_s13, %s946_s13   ;;  %s711_s12 = sphi %s756_s12, %s945_s12  }
   0x7   : > { %p786_p1 = scmp.eq.s32.totalorder %s496_s18, 0  ;;  %p498_p2 = scmp.ge.s32.totalorder %s731_s17, 1 }
   0x8   : > { %p133_p3 = scmp.lt.s32.totalorder %s731_s17, 3  ;;  %s146_s23 = sshll.u32 %s929_s1, 4  ;;  %s147_s23 = int_to_ptr.vmem [resolvable:$true] %s146_s23 }
   0x9   : > { %s936_s19 = scalar_select %p786_p1, 1, 0 }
   0xa   : > { %p794_p4 = por %p786_p1, %p52_p0  ;;  %p801_p5 = pnand %p498_p2, %p133_p3 }
   0xb   : > { %s157_s27 = sshll.u32 %s930_s2, 4  ;;  %s613_s29 = scalar_lea.vmem %s147_s23, 16  ;;  %s158_s27 = int_to_ptr.vmem [resolvable:$true] %s157_s27 }
   0xc   : > { %s937_s20 = scalar_select %p794_p4, 1, 0 }
   0xd   : > { %s938_s24 = scalar_select %p801_p5, 1, 0 }
   0xe   : > { %p547_p6 = pneg %p801_p5  ;;  %p614_p8 = scmp.ne.s32.totalorder %s147_s23, %s613_s29 }
   0xf   : > { %p621_p12 = scmp.lt.s32.totalorder %s147_s23, %s147_s23  ;;  %p622_p13 = scmp.lt.s32.totalorder %s613_s29, %s613_s29 }
  0x10   : > { %p812_p7 = pnand %p547_p6, %p786_p1 }
  0x11   : > { %p623_p0 = por %p622_p13, %p621_p12 }
  0x12   : > { %p615_p9 = pneg %p812_p7 }
  0x14   : > { %p616_p10 = pnand %p615_p9, %p614_p8 }
  0x16   : > { %p617_p11 = pneg %p616_p10 }
  0x18   : > { %p624_p2 = pnand %p623_p0, %p617_p11 }
  0x1a   : > { %627 = shalt.err (!%p624_p2)
}
  0x1b   : > { %s733_s30 = smov [#allocation5]   ;;  %s628_s4 = scalar_lea.vmem %s158_s27, 16 }
  0x1c   : > { %550 = dma.vmem_to_smem (!%p812_p7), %s147_s23, 16, %s733_s30, [#allocation4]  }
  0x1d   : > { %p629_p3 = scmp.ne.s32.totalorder %s158_s27, %s628_s4  ;;  %p636_p4 = scmp.lt.s32.totalorder %s158_s27, %s158_s27 }
  0x1e   : > { %p637_p5 = scmp.lt.s32.totalorder %s628_s4, %s628_s4 }
  0x1f   : > { %p631_p6 = pnand %p629_p3, %p615_p9 }
  0x20   : > { %p638_p8 = por %p637_p5, %p636_p4 }
  0x21   : > { %p632_p1 = pneg %p631_p6 }
  0x23   : > { %p639_p10 = pnand %p638_p8, %p632_p1 }
  0x25   : > { %642 = shalt.err (!%p639_p10)
}
  0x26   : > { %s734_s5 = smov [#allocation6]   ;;  %s30_s6 = sadd.s32 1, %s727_s16 }
  0x27   : > { %553 = dma.vmem_to_smem (!%p812_p7), %s158_s27, 16, %s734_s5, [#allocation7]  }
  0x28   : > { %s39_s7 = sadd.s32 1, %s719_s14  ;;  %p32_p9 = scmp.ge.s32.totalorder %s30_s6, 2 }
  0x29   : > { %p46_p1 = scmp.ne.s32.totalorder %s719_s14, %s715_s13  ;;  %p47_p4 = scmp.eq.s32.totalorder %s731_s17, 0 }
  0x2a   : > { %p560_p5 = scmp.lt.s32.totalorder %s731_s17, 2  ;;  %s951_s6 = smov (%p32_p9, %s30_s6), 0 }
  0x2b   : > { %p48_p11 = por %p47_p4, %p46_p1  ;;  %s168_s8 = sand.u32 1, %s719_s14  }
  0x2c   : > { %s34_s9 = ssub.s32 %s727_s16, %s951_s6  ;;  %s502_s10 = sshll.u32 %s168_s8, 3 }
  0x2d   : > { %p37_p12 = scmp.eq.s32.totalorder %s34_s9, 0  ;;  %s535_s11 = sshll.u32 %s727_s16, 7 }
  0x2e   : > { %s840_s22 = scalar_lea.hbm %s928_s0, %s535_s11  ;;  %s172_s23 = scalar_lea.vmem [#allocation2], %s502_s10 }
  0x2f   : > { %s835_s12 = scalar_select %p37_p12, %s719_s14, %s39_s7  }
  0x30   : > { %s182_s25 = sshll.u32 %s172_s23, 4  ;;  %p846_p7 = pnand %p560_p5, %p48_p11  ;;  %s842_s25 = int_to_ptr.vmem [resolvable:$true] %s182_s25 }
  0x31   : > { %s169_s27 = scalar_lea.sflag [#allocation3], %s168_s8  ;;  %s643_s28 = scalar_lea.hbm %s840_s22, 128 }
  0x32   : > { %p644_p13 = scmp.ne.s32.totalorder %s840_s22, %s643_s28  ;;  %p645_p0 = pneg %p846_p7 }
  0x33   : > { %s648_s4 = scalar_lea.hbm %s928_s0, 256  ;;  %p649_p6 = scmp.lt.u32.totalorder %s840_s22, %s928_s0 }
  0x34   : > { %p646_p2 = pnand %p645_p0, %p644_p13  ;;  %p650_p8 = scmp.lt.u32.totalorder %s648_s4, %s643_s28 }
  0x35   : > { %p652_p9 = scmp.lt.u32.totalorder %s643_s28, %s840_s22 }
  0x36   : > { %p647_p3 = pneg %p646_p2  ;;  %p651_p10 = por %p650_p8, %p649_p6 }
  0x38   : > { %p653_p1 = por %p652_p9, %p651_p10 }
  0x3a   : > { %p654_p4 = pnand %p653_p1, %p647_p3 }
  0x3c   : > { %657 = shalt.err (!%p654_p4)
}
  0x3d   : > { %s658_s8 = scalar_lea.vmem %s842_s25, 128  ;;  %s735_s9 = smov [#allocation2]  }
  0x3e   : > { %p659_p5 = scmp.ne.s32.totalorder %s842_s25, %s658_s8  ;;  %s663_s10 = sshll.u32 %s735_s9, 4  ;;  %s664_s10 = int_to_ptr.vmem [resolvable:$false] %s663_s10 }
  0x3f   : > { %s665_s11 = scalar_lea.vmem %s664_s10, 256  ;;  %p666_p13 = scmp.lt.s32.totalorder %s842_s25, %s664_s10 }
  0x40   : > { %p661_p11 = pnand %p659_p5, %p645_p0  ;;  %p667_p2 = scmp.lt.s32.totalorder %s665_s11, %s658_s8 }
  0x42   : > { %p662_p12 = pneg %p661_p11  ;;  %p668_p6 = por %p667_p2, %p666_p13 }
  0x44   : > { %p669_p8 = pnand %p668_p6, %p662_p12 }
  0x46   : > { %672 = shalt.err (!%p669_p8)
}
  0x47   : > { %557 = dma.hbm_to_vmem [thread:$0]  (!%p846_p7), %s840_s22, 128, %s842_s25, %s169_s27  }
  0x48   : > { %p941_p3 = scmp.ne.s32.totalorder %s938_s24, 0 }
  0x49   : > { %s193_s18 = sand.u32 (!%p941_p3), 1, %s715_s13   ;;  %p942_p0 = scmp.ne.s32.totalorder (!%p941_p3), %s937_s20, 0 }
  0x4a   : > { %191 = sbr.rel (%p941_p3) target bundleno = 120 (0x78), region = 32  ;;  %s506_s21 = sshll.u32 (!%p941_p3), %s193_s18, 3 }
  0x4b   : > { %s194_s23 = scalar_lea.sflag (!%p941_p3), [#allocation3], %s193_s18  ;;  %s197_s28 = scalar_lea.vmem (!%p941_p3), [#allocation2], %s506_s21 }
  0x51   : > { %698 = dma.done.wait (%p942_p0), %s194_s23, 128  }
  0x52   : > { %700 = vsyncadd (%p942_p0), %s194_s23, 4294967168  ;;  %p943_p10 = scmp.ne.s32.totalorder %s936_s19, 0 }
  0x54   : > { %702 = dma.done.wait (%p943_p10), [#allocation4], 16  }
  0x55   : > { %704 = vsyncadd (%p943_p10), [#allocation4], 4294967280 }
  0x56   : > { %706 = dma.done.wait (%p943_p10), [#allocation7], 16  }
  0x57   : > { %708 = vsyncadd (%p943_p10), [#allocation7], 4294967280 }
  0x58   : > { %210 = sfence }
  0x59   : > { %s245_s24 = sld [smem:[#allocation5]]  ;;  %s511_s22 = sld [smem:[#allocation5 + $0x1]]  ;;  %v244_v0 = vld [vmem:[%s197_s28] sm:$0xff]  ;;  %v336_v4 = vlaneseq  ;;  %vm368_vm0 = vcmask 1040384   ;;  %vm371_vm1 = vcmask 1041408  }
  0x5a   : > { %s513_s25 = sld [smem:[#allocation5 + $0x2]]  ;;  %s515_s26 = sld [smem:[#allocation5 + $0x3]] }
  0x5b   : > { %s517_s27 = sld [smem:[#allocation5 + $0x4]]  ;;  %s890_s20 = sld [smem:[#allocation6]]  ;;  %v337_v15 = vshrl.u32 %v336_v4, 7 }
  0x5c   : > { %s518_s29 = sld [smem:[#allocation5 + $0x5]]  ;;  %s520_s30 = sld [smem:[#allocation5 + $0x6]] }
  0x5d   : > { %s522_s4 = sld [smem:[#allocation5 + $0x7]]  ;;  %s525_s5 = sld [smem:[#allocation5 + $0x8]]  ;;  %v338_v40 = vsub.s32 0, %v337_v15  ;;  %v342_v44 = vsub.s32 4, %v337_v15 }
  0x5e   : > { %s892_s19 = sld [smem:[#allocation5 + $0x9]]  ;;  %s894_s7 = sld [smem:[#allocation5 + $0xa]] }
  0x5f   : > { %v246_v1 = vstv %s245_s24  ;;  %v249_v2 = vstv %s511_s22  ;;  %s896_s8 = sld [smem:[#allocation5 + $0xb]]  ;;  %s898_s9 = sld [smem:[#allocation6 + $0x1]] }
  0x60   : > { %v257_v3 = vstv %s513_s25  ;;  %v247_v5 = vmul.f32 %v246_v1, %v244_v0  ;;  %v250_v6 = vmul.f32 %v249_v2, %v244_v0  ;;  %v265_v8 = vstv %s515_s26  ;;  %s532_s10 = sld [smem:[#allocation6 + $0x2]]  ;;  %p235_p7 = scmp.lt.s32.totalorder %s723_s15, 1 }
  0x61   : > { %v258_v7 = vmul.f32 %v257_v3, %v244_v0  ;;  %v266_v11 = vmul.f32 %v265_v8, %v244_v0  ;;  %v276_v12 = vstv %s517_s27  ;;  %v273_v20 = vstv %s890_s20 }
  0x62   : > { %v512_v9 = vrot.slane %v250_v6, 9  ;;  %v277_v13 = vmul.f32 %v276_v12, %v244_v0  ;;  %v279_v14 = vstv %s518_s29  ;;  %v287_v19 = vstv %s520_s30  ;;  %s953_s15 = smov (!%p235_p7, %s723_s15), 1 }
  0x63   : > { %v514_v10 = vrot.slane %v258_v7, 10  ;;  %v516_v17 = vrot.slane %v266_v11, 11  ;;  %v280_v18 = vmul.f32 %v279_v14, %v244_v0  ;;  %v288_v21 = vmul.f32 %v287_v19, %v244_v0  ;;  %s536_s11 = sshll.u32 %s953_s15, 3 }
  0x64   : > { %v255_v16 = vadd.f32 %v512_v9, %v247_v5  ;;  %v295_v22 = vstv %s522_s4  ;;  %v306_v23 = vstv %s525_s5  ;;  %v309_v29 = vstv %s892_s19  ;;  %s242_s23 = scalar_lea.vmem %s931_s3, %s536_s11 }
  0x65   : > { %v519_v25 = vrot.slane %v280_v18, 9  ;;  %v296_v26 = vmul.f32 %v295_v22, %v244_v0  ;;  %v307_v27 = vmul.f32 %v306_v23, %v244_v0  ;;  %v521_v28 = vrot.slane %v288_v21, 10 }
  0x66   : > { %v263_v24 = vadd.f32 %v514_v10, %v255_v16  ;;  %v317_v30 = vstv %s894_s7  ;;  %v325_v31 = vstv %s896_s8  ;;  %v310_v35 = vmul.f32 %v309_v29, %v244_v0 }
  0x67   : > { %v285_v33 = vadd.f32 %v519_v25, %v277_v13  ;;  %v523_v34 = vrot.slane %v296_v26, 11  ;;  %v318_v36 = vmul.f32 %v317_v30, %v244_v0  ;;  %v326_v37 = vmul.f32 %v325_v31, %v244_v0 }
  0x68   : > { %v271_v32 = vadd.f32 %v516_v17, %v263_v24  ;;  %v527_v39 = vrot.slane %v310_v35, 9  ;;  %v303_v42 = vstv %s898_s9  ;;  %v333_v50 = vstv %s532_s10 }
  0x69   : > { %v293_v38 = vadd.f32 %v521_v28, %v285_v33  ;;  %v529_v43 = vrot.slane %v318_v36, 10  ;;  %v531_v47 = vrot.slane %v326_v37, 11 }
  0x6a   : > { %v274_v41 = vadd.f32 %v273_v20, %v271_v32  ;;  %v315_v46 = vadd.f32 %v527_v39, %v307_v27 }
  0x6b   : > { %v301_v45 = vadd.f32 %v523_v34, %v293_v38 }
  0x6c   : > { %v323_v49 = vadd.f32 %v529_v43, %v315_v46  ;;  %v339_v51 = vrot.slane %v274_v41, %v338_v40  ;;  %v343_v52 = vrot.slane %v274_v41, %v342_v44 }
  0x6d   : > { %v304_v48 = vadd.f32 %v303_v42, %v301_v45 }
  0x6e   : > { %v331_v53 = vadd.f32 %v531_v47, %v323_v49 }
  0x6f   : > { %v350_v54 = vrot.slane %v304_v48, %v338_v40  ;;  %v354_v55 = vrot.slane %v304_v48, %v342_v44 }
  0x70   : > { %v334_v56 = vadd.f32 %v333_v50, %v331_v53 }
  0x71   : > { %v369_v57 = vsel %vm368_vm0, %v339_v51, %v350_v54  ;;  %v370_v58 = vsel %vm368_vm0, %v343_v52, %v354_v55 }
  0x72   : > { %v361_v59 = vrot.slane %v334_v56, %v338_v40  ;;  %v365_v60 = vrot.slane %v334_v56, %v342_v44 }
  0x74   : > { %v372_v61 = vsel %vm371_vm1, %v369_v57, %v361_v59  ;;  %v373_v62 = vsel %vm371_vm1, %v370_v58, %v365_v60 }
  0x75   : > { %v376_v63 = vcombine.low %v372_v61, %v373_v62 }
  0x77   : > { %378 = vst [vmem:[%s242_s23] sm:$0x77] %v376_v63 }
  0x78 PF: > { %s18_s17 = sadd.s32 1, %s731_s17   ;;  %s944_s15 = smov %s835_s12 }
  0x79   : > { %p15_p9 = scmp.ge.s32.totalorder %s18_s17, 4   ;;  %s945_s12 = smov %s715_s13 }
  0x7a   : > { %s946_s13 = smov %s719_s14  ;;  %s947_s14 = smov %s944_s15 }
  0x7b   : > { %s948_s15 = smov %s727_s16  ;;  %s949_s16 = smov %s951_s6 }
  0x7c   :  { %17 = sbr.rel (!%p15_p9) target bundleno = 6 (0x6), region = 81 }
  0x83   :  { %409 = vsyncpa [#allocation3], 1 }
  0x84   :  { %411 = vsyncpa [#allocation3 + $0x1], 1 }
  0x85   :  { %412 = vsyncpa [#allocation4], 1 }
  0x86   :  { %414 = vsyncpa [#allocation4 + $0x1], 1 }
  0x87   :  { %415 = vsyncpa [#allocation7], 1 }

</bundles_post_ra>
